<compile_context>
chip_gen: v7x
topology: tpu7x:2x2x1
jax: 0.10.0
libtpu: 0.0.40
codegen_flags: <defaults>
</compile_context>

<pallas_src>
import jax
import jax.numpy as jnp
import numpy as np
from jax.experimental import pallas as pl
from jax.experimental.pallas import tpu as pltpu


def _patch_embed_kernel(patches_ref, w_ref, posb_ref, out_ref):
    # patches_ref: [1, TN, Kp]  (one batch element's patch tile)
    # w_ref:       [Kp, D]      (flattened conv weight, resident across grid)
    # posb_ref:    [TN, D]      (pos[1:] tile with conv bias folded in, f32)
    # out_ref:     [1, TN, D]
    proj = jnp.dot(patches_ref[0], w_ref[...], preferred_element_type=jnp.float32)
    out_ref[0] = (proj + posb_ref[...]).astype(out_ref.dtype)


def step3_vision_embeddings(pixel_values, conv_w, conv_b, class_embedding,
                            pos_embedding, *, patch_size, pad_tp_size=4,
                            tile_n=256, matmul_dtype=None, out_dtype=None):
    """pixel_values: [B, C, H, W] (NCHW). Returns [B, pad_tp_size - 1 + N + 1, D].

    tile_n: patch-axis tile size (use 128 on v5e, 256 on v6e/v7x).
    matmul_dtype: optional cast (e.g. jnp.bfloat16) for the MXU inputs.
    out_dtype: output dtype; defaults to pixel_values.dtype.
    """
    B, C, H, W = pixel_values.shape
    P = patch_size
    Gh, Gw = H // P, W // P
    N = Gh * Gw
    D = conv_w.shape[0]
    K = C * P * P
    if out_dtype is None:
        out_dtype = pixel_values.dtype

    # --- glue (plain JAX): patch extraction + weight flatten/transpose ---
    # Conv2d with kernel_size == stride == P is a non-overlapping patch
    # projection: patches[b, i*Gw+j, c*P*P + p*P + q] = x[b, c, i*P+p, j*P+q],
    # matching conv_w.reshape(D, C*P*P).
    # TODO(synk): in-kernel patch gather straight from NCHW (skipping this XLA
    # transpose pass) would need a (B, Gh) grid with manual relayout; not done.
    patches = pixel_values.reshape(B, C, Gh, P, Gw, P)
    patches = patches.transpose(0, 2, 4, 1, 3, 5).reshape(B, N, K)
    w_mat = conv_w.reshape(D, K).T                                   # [K, D]

    # get_abs_pos: src_size == tgt_size here, so the table is used as-is.
    # TODO(synk): bicubic antialiased interpolation path of get_abs_pos
    # (src_size != tgt_size) has no clean Pallas equivalent; not implemented.
    pos = pos_embedding.astype(jnp.float32)                          # [N+1, D]
    # Fold the conv bias into the patch-position table (one less add per tile).
    posb = pos[1:, :] + conv_b.reshape(1, D).astype(jnp.float32)     # [N, D]

    # Pad the contraction axis to a multiple of 128 (packed vld / MXU passes).
    Kp = -(-K // 128) * 128
    if Kp != K:
        patches = jnp.pad(patches, ((0, 0), (0, 0), (0, Kp - K)))
        w_mat = jnp.pad(w_mat, ((0, Kp - K), (0, 0)))

    # Tile the patch axis so real Step3 sizes (N ~ 2704, D = 1792) fit VMEM and
    # pipeline; pad N to a multiple of the tile if needed.
    if N <= tile_n:
        TN, N_pad = N, N
    else:
        assert tile_n % 8 == 0, "tile_n must be a multiple of 8"
        TN = tile_n
        N_pad = -(-N // TN) * TN
        if N_pad != N:
            patches = jnp.pad(patches, ((0, 0), (0, N_pad - N), (0, 0)))
            posb = jnp.pad(posb, ((0, N_pad - N), (0, 0)))
    n_tiles = N_pad // TN

    if matmul_dtype is not None:
        patches = patches.astype(matmul_dtype)
        w_mat = w_mat.astype(matmul_dtype)

    patch_out = pl.pallas_call(
        _patch_embed_kernel,
        out_shape=jax.ShapeDtypeStruct((B, N_pad, D), out_dtype),
        grid_spec=pltpu.PrefetchScalarGridSpec(
            num_scalar_prefetch=0,
            grid=(B, n_tiles),
            in_specs=[
                pl.BlockSpec((1, TN, Kp), lambda b, t: (b, t, 0)),
                pl.BlockSpec((Kp, D), lambda b, t: (0, 0)),   # resident weight
                pl.BlockSpec((TN, D), lambda b, t: (t, 0)),
            ],
            out_specs=pl.BlockSpec((1, TN, D), lambda b, t: (b, t, 0)),
        ),
        compiler_params=pltpu.CompilerParams(
            dimension_semantics=("parallel", "parallel"),
            vmem_limit_bytes=48 * 1024 * 1024,
        ),
    )(patches, w_mat, posb)

    if N_pad != N:
        patch_out = patch_out[:, :N, :]

    # Class-token rows: (class_embedding + pos[0]) replicated pad_tp_size times
    # ((pad_tp_size - 1) repeats of embeddings[:, 0, :] + the original row).
    cls_row = (class_embedding.reshape(1, D).astype(jnp.float32)
               + pos[0:1, :]).astype(out_dtype)                      # [1, D]
    cls_rows = jnp.broadcast_to(cls_row[None], (B, pad_tp_size, D))
    return jnp.concatenate([cls_rows, patch_out], axis=1)


if __name__ == "__main__":
    # Small config consistent with the module:
    #   image_size=16, patch_size=8 -> num_patches = (16//8)^2 = 4
    #   hidden_size (embed_dim) = 128, num_channels = 4, batch = 2
    B, C, IMG, P, D = 2, 4, 16, 8, 128
    N = (IMG // P) ** 2
    PAD_TP = 4

    key = jax.random.PRNGKey(0)
    k_x, k_w, k_b, k_cls, k_pos = jax.random.split(key, 5)

    pixel_values = jax.random.normal(k_x, (B, C, IMG, IMG), dtype=jnp.float32)
    conv_w = jax.random.normal(k_w, (D, C, P, P), dtype=jnp.float32) * 0.02
    conv_b = jax.random.normal(k_b, (D,), dtype=jnp.float32) * 0.02
    class_embedding = jax.random.normal(k_cls, (1, D), dtype=jnp.float32)
    pos_embedding = jax.random.normal(k_pos, (N + 1, D), dtype=jnp.float32) * 0.02

    out = step3_vision_embeddings(
        pixel_values, conv_w, conv_b, class_embedding, pos_embedding,
        patch_size=P, pad_tp_size=PAD_TP,
    )
    out = jax.block_until_ready(out)
    assert out.shape == (B, (PAD_TP - 1) + N + 1, D), out.shape

    # --- pure-JAX reference (conv semantics) for a correctness sanity check ---
    ref_conv = jax.lax.conv_general_dilated(
        pixel_values, conv_w, window_strides=(P, P), padding="VALID",
        dimension_numbers=("NCHW", "OIHW", "NCHW"),
    ) + conv_b.reshape(1, D, 1, 1)                                   # [B, D, Gh, Gw]
    ref_patch = ref_conv.reshape(B, D, N).transpose(0, 2, 1)          # [B, N, D]
    ref_cls = jnp.broadcast_to(class_embedding.reshape(1, 1, D), (B, 1, D))
    ref = jnp.concatenate([ref_cls, ref_patch], axis=1) + pos_embedding[None]
    ref = jnp.concatenate([jnp.repeat(ref[:, 0:1, :], PAD_TP - 1, axis=1), ref], axis=1)

    np.testing.assert_allclose(np.asarray(out), np.asarray(ref), rtol=1e-5, atol=1e-5)

    # Exercise the bf16-MXU path (v6e/v7x perf option) with loose tolerance.
    out_bf16 = step3_vision_embeddings(
        pixel_values, conv_w, conv_b, class_embedding, pos_embedding,
        patch_size=P, pad_tp_size=PAD_TP, matmul_dtype=jnp.bfloat16,
    )
    out_bf16 = jax.block_until_ready(out_bf16)
    np.testing.assert_allclose(np.asarray(out_bf16), np.asarray(ref),
                               rtol=5e-2, atol=5e-2)

    print("KERNEL_OK")
</pallas_src>

<mosaic_0001>
module attributes {stable_mosaic.version = 11 : i64} {
  func.func @_patch_embed_kernel(%arg0: i32, %arg1: i32, %arg2: memref<1x4x256xf32, #tpu.memory_space<vmem>>, %arg3: memref<256x128xf32, #tpu.memory_space<vmem>>, %arg4: memref<4x128xf32, #tpu.memory_space<vmem>>, %arg5: memref<1x4x128xf32, #tpu.memory_space<vmem>>) attributes {dimension_semantics = [#tpu.dimension_semantics<parallel>, #tpu.dimension_semantics<parallel>], iteration_bounds = array<i64: 2, 1>, scalar_prefetch = 0 : i64, scratch_operands = 0 : i64, tpu.core_type = #tpu.core_type<tc>, window_params = [{transform_indices = @transform_0, window_bounds = array<i64: 1, 4, 256>}, {pipeline_mode = #tpu.pipeline_mode<synchronous>, transform_indices = @transform_1, window_bounds = array<i64: 256, 128>}, {transform_indices = @transform_2, window_bounds = array<i64: 4, 128>}, {transform_indices = @transform_3, window_bounds = array<i64: 1, 4, 128>}]} {
    %c0 = arith.constant 0 : index
    %c0_0 = arith.constant 0 : index
    %c0_1 = arith.constant 0 : index
    %0 = vector.load %arg2[%c0, %c0_0, %c0_1] : memref<1x4x256xf32, #tpu.memory_space<vmem>>, vector<1x4x256xf32>
    %1 = vector.shape_cast %0 : vector<1x4x256xf32> to vector<4x256xf32>
    %c0_2 = arith.constant 0 : index
    %c0_3 = arith.constant 0 : index
    %2 = vector.load %arg3[%c0_2, %c0_3] : memref<256x128xf32, #tpu.memory_space<vmem>>, vector<256x128xf32>
    %cst = arith.constant dense<0.000000e+00> : vector<4x128xf32>
    %3 = tpu.matmul %1, %2, %cst {dimension_numbers = #tpu.dot_dimension_numbers<[1], [0], [0], [1], [0, 0, 1, 1], [], []>} : vector<4x256xf32>, vector<256x128xf32>, vector<4x128xf32> -> vector<4x128xf32>
    %c0_4 = arith.constant 0 : index
    %c0_5 = arith.constant 0 : index
    %4 = vector.load %arg4[%c0_4, %c0_5] : memref<4x128xf32, #tpu.memory_space<vmem>>, vector<4x128xf32>
    %5 = arith.addf %3, %4 : vector<4x128xf32>
    %c0_6 = arith.constant 0 : index
    %c0_7 = arith.constant 0 : index
    %c0_8 = arith.constant 0 : index
    %6 = vector.load %arg5[%c0_6, %c0_7, %c0_8] : memref<1x4x128xf32, #tpu.memory_space<vmem>>, vector<1x4x128xf32>
    %7 = vector.shape_cast %6 : vector<1x4x128xf32> to vector<4x128xf32>
    %8 = vector.shape_cast %5 : vector<4x128xf32> to vector<1x4x128xf32>
    tpu.vector_store %arg5[%c0_6, %c0_7, %c0_8], %8 {strides = array<i32>} : memref<1x4x128xf32, #tpu.memory_space<vmem>>, vector<1x4x128xf32>,
    return
  }
  func.func @transform_0(%arg0: i32, %arg1: i32) -> (i32, i32, i32) {
    %c0_i32 = arith.constant 0 : i32
    %c0_i32_0 = arith.constant 0 : i32
    return %arg0, %arg1, %c0_i32 : i32, i32, i32
  }
  func.func @transform_1(%arg0: i32, %arg1: i32) -> (i32, i32) {
    %c0_i32 = arith.constant 0 : i32
    %c0_i32_0 = arith.constant 0 : i32
    %c0_i32_1 = arith.constant 0 : i32
    return %c0_i32, %c0_i32_0 : i32, i32
  }
  func.func @transform_2(%arg0: i32, %arg1: i32) -> (i32, i32) {
    %c0_i32 = arith.constant 0 : i32
    %c0_i32_0 = arith.constant 0 : i32
    return %arg1, %c0_i32 : i32, i32
  }
  func.func @transform_3(%arg0: i32, %arg1: i32) -> (i32, i32, i32) {
    %c0_i32 = arith.constant 0 : i32
    %c0_i32_0 = arith.constant 0 : i32
    return %arg0, %arg1, %c0_i32 : i32, i32, i32
  }
}

</mosaic_0001>

<bundles_post_ra>
// kernel: tpu_custom_call.1
= control target key start
LH: loop header
LB: loop body
LE: loop exit
PB: predicated region body
PF: predicated region fallthrough
CT: control target
= control target key end

     0   :  { %8 = vsyncpa [#allocation3], 0  ;;  %s1020_s0 = inlined_call_operand.hbm [shape: f32[2,4,256], index: 0, kind: input, shape index: {}]   ;;  %s1021_s1 = inlined_call_operand.hbm [shape: f32[256,128], index: 1, kind: input, shape index: {}]   ;;  %s1022_s2 = inlined_call_operand.vmem [shape: f32[4,128], index: 2, kind: input, shape index: {}]   ;;  %s1023_s3 = inlined_call_operand.hbm [shape: f32[2,4,128], index: 3, kind: output, shape index: {}]  }
   0x1   :  { %10 = vsyncpa [#allocation3 + $0x1], 0 }
   0x2   :  { %11 = vsyncpa [#allocation6], 0 }
   0x3   :  { %12 = vsyncpa [#allocation4], 0 }
   0x4   :  { %14 = vsyncpa [#allocation4 + $0x1], 0  ;;  %s799_s12 = smov 0   ;;  %s801_s13 = smov 0  }
   0x5   :  { %s803_s14 = smov 0   ;;  %s805_s15 = smov 0  }
   0x6   :  { %s807_s16 = smov 0   ;;  %s809_s17 = smov 0  }
   0x7 LB: > { %s467_s18 = sadd.s32 4294967295, %s772_s17   ;;  %s468_s19 = sadd.s32 4294967294, %s772_s17   ;;  %s772_s17 = sphi %s809_s17, %s20_s17   ;;  %s768_s16 = sphi %s807_s16, %s1047_s16   ;;  %s764_s15 = sphi %s805_s15, %s1046_s15   ;;  %s760_s14 = sphi %s803_s14, %s1045_s14   ;;  %s756_s13 = sphi %s801_s13, %s1044_s13   ;;  %s752_s12 = sphi %s799_s12, %s1043_s12  }
   0x8   : > { %p54_p0 = scmp.ne.s32.totalorder %s756_s13, %s752_s12  ;;  %p833_p1 = scmp.eq.s32.totalorder %s467_s18, 0 }
   0x9   : > { %p837_p2 = scmp.eq.s32.totalorder %s467_s18, 1  ;;  %p133_p3 = scmp.eq.s32.totalorder %s468_s19, 1 }
   0xa   : > { %s1028_s20 = scalar_select %p833_p1, 1, 0 }
   0xb   : > { %s1029_s21 = scalar_select %p837_p2, 1, 0 }
   0xc   : > { %p843_p4 = por %p833_p1, %p54_p0  ;;  %p469_p5 = scmp.ge.s32.totalorder %s772_s17, 1 }
   0xd   : > { %p848_p6 = por %p133_p3, %p54_p0  ;;  %p140_p7 = scmp.lt.s32.totalorder %s772_s17, 3 }
   0xe   : > { %s1030_s22 = scalar_select %p843_p4, 1, 0 }
   0xf   : > { %s1031_s23 = scalar_select %p848_p6, 1, 0 }
  0x10   : > { %p853_p8 = pnand %p469_p5, %p140_p7  ;;  %s774_s25 = smov [#allocation5]  }
  0x11   : > { %s152_s26 = sshll.u32 %s774_s25, 4  ;;  %s32_s28 = sadd.s32 1, %s768_s16  ;;  %s153_s26 = int_to_ptr.vmem [resolvable:$true] %s152_s26 }
  0x12   : > { %s1032_s24 = scalar_select %p853_p8, 1, 0 }
  0x13   : > { %p560_p9 = pneg %p853_p8  ;;  %s628_s4 = scalar_lea.hbm %s1021_s1, 4096 }
  0x14   : > { %p629_p12 = scmp.ne.s32.totalorder %s1021_s1, %s628_s4  ;;  %p635_p5 = scmp.lt.u32.totalorder %s628_s4, %s1021_s1 }
  0x15   : > { %p862_p11 = pnand %p560_p9, %p833_p1 }
  0x17   : > { %p630_p13 = pneg %p862_p11 }
  0x19   : > { %p631_p0 = pnand %p630_p13, %p629_p12 }
  0x1b   : > { %p632_p3 = pneg %p631_p0 }
  0x1d   : > { %p637_p7 = pnand %p635_p5, %p632_p3 }
  0x1f   : > { %640 = shalt.err (!%p637_p7)
}
  0x20   : > { %s641_s9 = scalar_lea.vmem %s153_s26, 4096  ;;  %p649_p1 = scmp.lt.s32.totalorder %s153_s26, %s153_s26 }
  0x21   : > { %p642_p9 = scmp.ne.s32.totalorder %s153_s26, %s641_s9  ;;  %p650_p4 = scmp.lt.s32.totalorder %s641_s9, %s641_s9 }
  0x23   : > { %p644_p10 = pnand %p642_p9, %p630_p13  ;;  %p651_p8 = por %p650_p4, %p649_p1 }
  0x25   : > { %p645_p6 = pneg %p644_p10 }
  0x27   : > { %p652_p2 = pnand %p651_p8, %p645_p6 }
  0x29   : > { %655 = shalt.err (!%p652_p2)
}
  0x2a   : > { %s775_s10 = smov 128   ;;  %s776_s11 = smov 8  }
  0x2b   : > { %563 = dma.hbm_to_vmem [thread:$0]  (!%p862_p11), %s1021_s1, 4096, %s153_s26, [#allocation6], %s775_s10, %s775_s10, %s776_s11  }
  0x2c   : > { %p34_p1 = scmp.ge.s32.totalorder %s32_s28, 2  ;;  %s41_s25 = sadd.s32 1, %s760_s14 }
  0x2d   : > { %p48_p2 = scmp.ne.s32.totalorder %s760_s14, %s756_s13  ;;  %p49_p4 = scmp.eq.s32.totalorder %s772_s17, 0 }
  0x2e   : > { %s1049_s28 = smov (%p34_p1, %s32_s28), 0  ;;  %p1035_p8 = scmp.ne.s32.totalorder %s1029_s21, 0 }
  0x2f   : > { %p889_p6 = por %p49_p4, %p48_p2  ;;  %s36_s27 = ssub.s32 %s768_s16, %s1049_s28 }
  0x30   : > { %p895_p10 = por %p1035_p8, %p48_p2  ;;  %p573_p12 = scmp.lt.s32.totalorder %s772_s17, 2 }
  0x31   : > { %p39_p11 = scmp.eq.s32.totalorder %s36_s27, 0  ;;  %s173_s26 = sand.u32 1, %s760_s14  }
  0x32   : > { %s473_s4 = sshll.u32 %s173_s26, 3  ;;  %s484_s6 = sshll.u32 %s768_s16, 7 }
  0x33   : > { %s904_s5 = scalar_select %p39_p11, %s760_s14, %s41_s25  }
  0x34   : > { %s910_s9 = scalar_lea.hbm %s1020_s0, %s484_s6  ;;  %s177_s21 = scalar_lea.vmem [#allocation2], %s473_s4 }
  0x35   : > { %s187_s10 = sshll.u32 %s177_s21, 4  ;;  %p916_p13 = pnand %p573_p12, %p889_p6  ;;  %s912_s10 = int_to_ptr.vmem [resolvable:$true] %s187_s10 }
  0x36   : > { %s174_s18 = scalar_lea.sflag [#allocation3], %s173_s26  ;;  %s656_s19 = scalar_lea.hbm %s910_s9, 128 }
  0x37   : > { %p657_p0 = scmp.ne.s32.totalorder %s910_s9, %s656_s19  ;;  %p658_p3 = pneg %p916_p13 }
  0x38   : > { %s661_s4 = scalar_lea.hbm %s1020_s0, 256  ;;  %p662_p9 = scmp.lt.u32.totalorder %s910_s9, %s1020_s0 }
  0x39   : > { %p659_p5 = pnand %p658_p3, %p657_p0  ;;  %p663_p1 = scmp.lt.u32.totalorder %s661_s4, %s656_s19 }
  0x3a   : > { %p665_p4 = scmp.lt.u32.totalorder %s656_s19, %s910_s9 }
  0x3b   : > { %p660_p7 = pneg %p659_p5  ;;  %p664_p2 = por %p663_p1, %p662_p9 }
  0x3d   : > { %p666_p6 = por %p665_p4, %p664_p2 }
  0x3f   : > { %p667_p8 = pnand %p666_p6, %p660_p7 }
  0x41   : > { %670 = shalt.err (!%p667_p8)
}
  0x42   : > { %s671_s26 = scalar_lea.vmem %s912_s10, 128  ;;  %s777_s7 = smov [#allocation2]  }
  0x43   : > { %p672_p12 = scmp.ne.s32.totalorder %s912_s10, %s671_s26  ;;  %s676_s8 = sshll.u32 %s777_s7, 4  ;;  %s677_s8 = int_to_ptr.vmem [resolvable:$false] %s676_s8 }
  0x44   : > { %s678_s21 = scalar_lea.vmem %s677_s8, 256  ;;  %p679_p5 = scmp.lt.s32.totalorder %s912_s10, %s677_s8 }
  0x45   : > { %p674_p11 = pnand %p672_p12, %p658_p3  ;;  %p680_p9 = scmp.lt.s32.totalorder %s678_s21, %s671_s26 }
  0x47   : > { %p675_p0 = pneg %p674_p11  ;;  %p681_p1 = por %p680_p9, %p679_p5 }
  0x49   : > { %p682_p2 = pnand %p681_p1, %p675_p0 }
  0x4b   : > { %685 = shalt.err (!%p682_p2)
}
  0x4c   : > { %567 = dma.hbm_to_vmem [thread:$0]  (!%p916_p13), %s910_s9, 128, %s912_s10, %s174_s18  }
  0x4d   : > { %p1038_p7 = scmp.ne.s32.totalorder %s1032_s24, 0 }
  0x4e   : > { %s948_s19 = sand.u32 (!%p1038_p7), 1, %s756_s13   ;;  %p1039_p3 = scmp.ne.s32.totalorder (!%p1038_p7), %s1030_s22, 0 }
  0x4f   : > { %196 = sbr.rel (%p1038_p7) target bundleno = 356 (0x164), region = 32  ;;  %s477_s25 = sshll.u32 (!%p1038_p7), %s948_s19, 3 }
  0x50   : > { %s199_s27 = scalar_lea.sflag (!%p1038_p7), [#allocation3], %s948_s19  ;;  %s952_s4 = scalar_lea.vmem (!%p1038_p7), [#allocation2], %s477_s25 }
  0x56   : > { %739 = dma.done.wait (%p1039_p3), %s199_s27, 128  }
  0x57   : > { %741 = vsyncadd (%p1039_p3), %s199_s27, 4294967168  ;;  %p1040_p13 = scmp.ne.s32.totalorder %s1028_s20, 0 }
  0x59   : > { %743 = dma.done.wait (%p1040_p13), [#allocation6], 4096  }
  0x5a   : > { %745 = vsyncadd (%p1040_p13), [#allocation6], 4294963200  ;;  %v254_v0 = vld [vmem:[#allocation5 + $0x80] sm:$0xff]  ;;  %v255_v1 = vld [vmem:[#allocation5 + $0x88] sm:$0xff]  ;;  %s479_s20 = sshll.u32 %s948_s19, 2  ;;  %s481_s9 = sshll.u32 %s764_s15, 6 }
  0x5b   : > { %v238_v2 = vld [vmem:[#allocation5] sm:$0xff]  ;;  %v520_v3 = vpack.c.bf16 %v255_v1, %v254_v0  ;;  %v239_v4 = vld [vmem:[#allocation5 + $0x8] sm:$0xff]  ;;  %v256_v5 = vld [vmem:[#allocation5 + $0x90] sm:$0xff]  ;;  %s232_s10 = scalar_lea.vmem [#allocation7], %s479_s20  ;;  %s971_s6 = scalar_lea.hbm %s1023_s3, %s481_s9 }
  0x5c   : > { %v257_v6 = vld [vmem:[#allocation5 + $0x98] sm:$0xff]  ;;  %v522_v7 = vpack.c.bf16 %v239_v4, %v238_v2  ;;  %v240_v9 = vld [vmem:[#allocation5 + $0x10] sm:$0xff]  ;;  %v258_v11 = vld [vmem:[#allocation5 + $0xa0] sm:$0xff]  ;;  %s360_s11 = sshll.u32 %s232_s10, 4  ;;  %s346_s26 = scalar_lea.sflag [#allocation4], %s948_s19  ;;  %s973_s11 = int_to_ptr.vmem [resolvable:$true] %s360_s11 }
  0x5d   : > { %v524_v8 = vpack.c.bf16 %v257_v6, %v256_v5  ;;  %v241_v10 = vld [vmem:[#allocation5 + $0x18] sm:$0xff]  ;;  %521 = vmatprep.subr.bf16.mxu0 %v520_v3  ;;  %v259_v12 = vld [vmem:[#allocation5 + $0xa8] sm:$0xff]  ;;  %v242_v15 = vld [vmem:[#allocation5 + $0x20] sm:$0xff]  ;;  %s686_s7 = scalar_lea.vmem %s973_s11, 64  ;;  %s778_s15 = smov [#allocation7]  }
  0x5e   : > { %523 = vmatpush3.bf16.msra.mxu0 %v522_v7  ;;  %v526_v13 = vpack.c.bf16 %v241_v10, %v240_v9  ;;  %v528_v14 = vpack.c.bf16 %v259_v12, %v258_v11  ;;  %v243_v16 = vld [vmem:[#allocation5 + $0x28] sm:$0xff]  ;;  %v260_v17 = vld [vmem:[#allocation5 + $0xb0] sm:$0xff]  ;;  %v261_v18 = vld [vmem:[#allocation5 + $0xb8] sm:$0xff]  ;;  %p687_p4 = scmp.ne.s32.totalorder %s973_s11, %s686_s7  ;;  %s690_s8 = sshll.u32 %s778_s15, 4  ;;  %s691_s8 = int_to_ptr.vmem [resolvable:$false] %s690_s8 }
  0x5f   : > { %525 = vmatprep.subr.bf16.mxu0 %v524_v8  ;;  %v530_v19 = vpack.c.bf16 %v243_v16, %v242_v15  ;;  %v532_v20 = vpack.c.bf16 %v261_v18, %v260_v17  ;;  %v244_v21 = vld [vmem:[#allocation5 + $0x30] sm:$0xff]  ;;  %v245_v22 = vld [vmem:[#allocation5 + $0x38] sm:$0xff]  ;;  %v262_v23 = vld [vmem:[#allocation5 + $0xc0] sm:$0xff]  ;;  %s692_s21 = scalar_lea.vmem %s691_s8, 128  ;;  %p693_p12 = scmp.lt.s32.totalorder %s973_s11, %s691_s8 }
  0x60   : > { %v263_v24 = vld [vmem:[#allocation5 + $0xc8] sm:$0xff]  ;;  %v237_v25 = vld [vmem:[%s952_s4] sm:$0xff]  ;;  %v534_v27 = vpack.c.bf16 %v245_v22, %v244_v21  ;;  %v246_v29 = vld [vmem:[#allocation5 + $0x40] sm:$0xff]  ;;  %p688_p6 = pnand %p687_p4, %p895_p10  ;;  %p694_p11 = scmp.lt.s32.totalorder %s692_s21, %s686_s7 }
  0x61   : > { %v272_v26 = vcombine.high %v237_v25, %v237_v25  ;;  %v536_v28 = vpack.c.bf16 %v263_v24, %v262_v23  ;;  %v247_v30 = vld [vmem:[#allocation5 + $0x48] sm:$0xff]  ;;  %v264_v31 = vld [vmem:[#allocation5 + $0xd0] sm:$0xff]  ;;  %v265_v32 = vld [vmem:[#allocation5 + $0xd8] sm:$0xff] }
  0x62   : > { %527 = vmatpush3.bf16.msra.mxu0 %v526_v13  ;;  %v538_v33 = vpack.c.bf16 %v247_v30, %v246_v29  ;;  %v540_v34 = vpack.c.bf16 %v265_v32, %v264_v31  ;;  %v248_v35 = vld [vmem:[#allocation5 + $0x50] sm:$0xff]  ;;  %v249_v36 = vld [vmem:[#allocation5 + $0x58] sm:$0xff]  ;;  %v266_v37 = vld [vmem:[#allocation5 + $0xe0] sm:$0xff]  ;;  %p689_p8 = pneg %p688_p6  ;;  %p695_p0 = por %p694_p11, %p693_p12 }
  0x63   : > { %529 = vmatprep.subr.bf16.mxu0 %v528_v14  ;;  %338 = vmatprep.mubr.f32.mxu0 %v272_v26  ;;  %v267_v38 = vld [vmem:[#allocation5 + $0xe8] sm:$0xff]  ;;  %v542_v39 = vpack.c.bf16 %v249_v36, %v248_v35  ;;  %v250_v41 = vld [vmem:[#allocation5 + $0x60] sm:$0xff]  ;;  %v268_v43 = vld [vmem:[#allocation5 + $0xf0] sm:$0xff] }
  0x64   : > { %v544_v40 = vpack.c.bf16 %v267_v38, %v266_v37  ;;  %v251_v42 = vld [vmem:[#allocation5 + $0x68] sm:$0xff]  ;;  %v269_v44 = vld [vmem:[#allocation5 + $0xf8] sm:$0xff]  ;;  %v252_v47 = vld [vmem:[#allocation5 + $0x70] sm:$0xff]  ;;  %p696_p5 = pnand %p695_p0, %p689_p8 }
  0x65   : > { %v546_v45 = vpack.c.bf16 %v251_v42, %v250_v41  ;;  %v548_v46 = vpack.c.bf16 %v269_v44, %v268_v43  ;;  %v253_v48 = vld [vmem:[#allocation5 + $0x78] sm:$0xff]  ;;  %v270_v51 = vld [vmem:[%s1022_s2] sm:$0xf] }
  0x66   : > { %531 = vmatpush3.bf16.msra.mxu0 %v530_v19  ;;  %v550_v49 = vpack.c.bf16 %v253_v48, %v252_v47 }
  0x67   : > { %533 = vmatprep.subr.bf16.mxu0 %v532_v20 }
  0x6a   : > { %535 = vmatpush3.bf16.msra.mxu0 %v534_v27 }
  0x6b   : > { %537 = vmatprep.subr.bf16.mxu0 %v536_v28 }
  0x6e   : > { %539 = vmatpush3.bf16.msra.mxu0 %v538_v33 }
  0x6f   : > { %541 = vmatprep.subr.bf16.mxu0 %v540_v34 }
  0x72   : > { %543 = vmatpush3.bf16.msra.mxu0 %v542_v39 }
  0x73   : > { %545 = vmatprep.subr.bf16.mxu0 %v544_v40 }
  0x76   : > { %547 = vmatpush3.bf16.msra.mxu0 %v546_v45 }
  0x77   : > { %549 = vmatprep.subr.bf16.mxu0 %v548_v46 }
  0x7a   : > { %551 = vmatpush3.bf16.msra.mxu0 %v550_v49 }
  0x7d   : > { %339 = vmatmul.mubr.f32.vlgmr.msra.gmra.mrb[0].mxu0 %v237_v25 }
 0x150   : > { %v517_v50 = vpop.f32.mrb[0].mxu0 }
 0x151   : > { %v518_v52 = vpop.f32.mrb[1].mxu0 }
 0x152   : > { %v519_v53 = vadd.f32 %v518_v52, %v517_v50 }
 0x154   : > { %v341_v54 = vadd.f32 %v519_v53, %v270_v51 }
 0x156   : > { %344 = vst [vmem:[%s232_s10] sm:$0xf] %v341_v54 }
 0x157   : > { %699 = shalt.err (!%p696_p5)
}
 0x158   : > { %s700_s19 = scalar_lea.hbm %s971_s6, 64  ;;  %s704_s4 = scalar_lea.hbm %s1023_s3, 128 }
 0x159   : > { %p701_p9 = scmp.ne.s32.totalorder %s971_s6, %s700_s19  ;;  %p705_p7 = scmp.lt.u32.totalorder %s971_s6, %s1023_s3 }
 0x15a   : > { %p706_p3 = scmp.lt.u32.totalorder %s704_s4, %s700_s19  ;;  %p708_p4 = scmp.lt.u32.totalorder %s700_s19, %s971_s6 }
 0x15b   : > { %p702_p1 = pnand %p701_p9, %p895_p10 }
 0x15c   : > { %p707_p13 = por %p706_p3, %p705_p7 }
 0x15d   : > { %p703_p2 = pneg %p702_p1 }
 0x15e   : > { %p709_p6 = por %p708_p4, %p707_p13 }
 0x160   : > { %p710_p8 = pnand %p709_p6, %p703_p2 }
 0x162   : > { %713 = shalt.err (!%p710_p8)
}
 0x163   : > { %558 = dma.vmem_to_hbm [thread:$0]  (%p895_p10), %s973_s11, 64, %s971_s6, %s346_s26  }
 0x164 PF: > { %s372_s24 = sand.u32 1, %s752_s12   ;;  %p1041_p12 = scmp.ne.s32.totalorder %s1031_s23, 0 }
 0x165   : > { %p1042_p11 = scmp.ge.s32.totalorder %s772_s17, 2  ;;  %s373_s9 = scalar_lea.sflag [#allocation4], %s372_s24 }
 0x167   : > { %p569_p0 = pnand %p1042_p11, %p1041_p12 }
 0x169   : > { %747 = dma.done.wait (!%p569_p0), %s373_s9, 64  }
 0x16a   : > { %749 = vsyncadd (!%p569_p0), %s373_s9, 4294967232  ;;  %s20_s17 = sadd.s32 1, %s772_s17   ;;  %s1043_s12 = smov %s756_s13 }
 0x16b   : > { %p17_p5 = scmp.ge.s32.totalorder %s20_s17, 4   ;;  %s1044_s13 = smov %s760_s14 }
 0x16c   : > { %s1045_s14 = smov %s904_s5  ;;  %s1046_s15 = smov %s768_s16 }
 0x16d   : > { %s1047_s16 = smov %s1049_s28  ;;  %19 = sbr.rel (!%p17_p5) target bundleno = 7 (0x7), region = 84 }
 0x174   :  { %378 = vsyncpa [#allocation3], 1 }
 0x175   :  { %380 = vsyncpa [#allocation3 + $0x1], 1 }
 0x176   :  { %381 = vsyncpa [#allocation6], 1 }
 0x177   :  { %382 = vsyncpa [#allocation4], 1 }
 0x178   :  { %384 = vsyncpa [#allocation4 + $0x1], 1 }

</bundles_post_ra>
